<compile_context>
chip_gen: v7x
topology: tpu7x:2x2x1
jax: 0.10.0
libtpu: 0.0.40
codegen_flags: <defaults>
</compile_context>

<pallas_src>
import jax
import jax.numpy as jnp
from jax.experimental import pallas as pl
from jax.experimental.pallas import tpu as pltpu


def _round_up(x: int, m: int) -> int:
    return (x + m - 1) // m * m


def _vmem_capacity_bytes() -> int:
    """Best-effort per-core VMEM capacity; conservative 64 MiB fallback (v7x)."""
    try:
        info = pltpu.get_tpu_info()
        for attr in ("vmem_capacity_bytes", "vmem_size_bytes", "vmem_bytes"):
            v = getattr(info, attr, None)
            if v:
                return int(v)
    except Exception:
        pass
    return 64 * 1024 * 1024


def _make_swiglu_kernel(tk: int, use_scratch: bool):
    """Build the SwiGLU kernel for a given fc1 half-block width `tk`.

    Refs per grid point (i = row tile, k = d_ff chunk):
      x_ref : (tm, Cp)      activation rows (same block across k -> resident)
      w1_ref: (Cp, 2*tk)    fc1 columns; [:, :tk] = gate half, [:, tk:] = value half
      w2_ref: (tk, Cp)      fc2 rows for this d_ff chunk
      o_ref : (tm, Cp)      output rows (resident across k)
      acc   : (tm, Cp) f32  only when out dtype is not f32 and k grid > 1
    """

    def kernel(x_ref, w1_ref, w2_ref, o_ref, *scratch):
        k = pl.program_id(1)
        nk = pl.num_programs(1)

        # One wide fc1 matmul for this chunk, f32 accumulation on the MXU.
        xp = jnp.dot(x_ref[...], w1_ref[...], preferred_element_type=jnp.float32)
        x1 = xp[:, :tk]          # gate half   (static, lane-aligned slice)
        x2 = xp[:, tk:]          # value half

        # SwiGLU gate in f32 (sigmoid goes to the EUP slot, ~free next to the MXU).
        gated = (x1 * jax.nn.sigmoid(x1) * x2).astype(w2_ref.dtype)

        # fc2 partial product for this d_ff chunk.
        partial = jnp.dot(gated, w2_ref[...], preferred_element_type=jnp.float32)

        if use_scratch:
            acc_ref = scratch[0]

            @pl.when(k == 0)
            def _init():
                acc_ref[...] = partial

            @pl.when(k > 0)
            def _acc():
                acc_ref[...] += partial

            @pl.when(k == nk - 1)
            def _flush():
                # dropout(p=0.0) is the identity.
                o_ref[...] = acc_ref[...].astype(o_ref.dtype)
        else:
            # f32 output (or single k step): accumulate directly into the
            # resident output block -- no scratch, no zero+add.
            @pl.when(k == 0)
            def _init():
                o_ref[...] = partial.astype(o_ref.dtype)

            @pl.when(k > 0)
            def _acc():
                o_ref[...] += partial.astype(o_ref.dtype)

        # TODO(synk): dropout with p > 0 would need pltpu.prng_seed /
        # prng_random_bits masking on the final write.

    return kernel


def prepare_swiglu_params(w1, w2, *, n_rows_hint=1024,
                          matmul_dtype=jnp.bfloat16, out_dtype=jnp.float32):
    """One-time weight layout + tile selection (hoisted out of the hot path).

    w1: [C, 2*d_ff]   (transposed vs. torch nn.Linear, bias=False)
    w2: [d_ff, C]
    """
    C, two_dff = w1.shape
    d_ff = two_dff // 2
    assert w2.shape == (d_ff, C)

    w_isz = jnp.dtype(matmul_dtype).itemsize
    x_isz = w_isz                                   # activations cast to matmul dtype
    out_isz = jnp.dtype(out_dtype).itemsize
    sublane = max(8, 32 // max(1, w_isz))           # 8 (f32) / 16 (bf16) / 32 (int8)

    Cp = _round_up(C, 128)
    Fp0 = _round_up(d_ff, 128)

    vmem_cap = _vmem_capacity_bytes()
    budget = int(vmem_cap * 0.75)

    # Row tile: weight-stream arithmetic intensity ~ tm FLOP/byte, so go big.
    tm_target = 768 if vmem_cap >= 96 * 1024 * 1024 else 512
    tm = min(tm_target, _round_up(max(1, n_rows_hint), sublane))
    # Keep >= 2 row tiles when M allows so the "parallel" axis can shard across
    # TensorCores (v7x has 2 TCs/chip).
    if n_rows_hint > sublane and _round_up(n_rows_hint, tm) // tm < 2:
        cand = max(sublane, _round_up(tm // 2, sublane))
        if _round_up(n_rows_hint, cand) // cand >= 2:
            tm = cand

    def footprint(tm_, tk_, with_scratch):
        b = (2 * tm_ * Cp * x_isz            # x tiles (double-buffered)
             + 2 * (2 * tk_) * Cp * w_isz    # fused fc1 tiles
             + 2 * tk_ * Cp * w_isz          # fc2 tiles
             + 2 * tm_ * Cp * out_isz)       # output tiles
        if with_scratch:
            b += tm_ * Cp * 4                # f32 accumulator
        return b

    # Prefer collapsing the reduction axis: weights resident in VMEM, DMA'd
    # exactly once per call instead of once per row tile.
    resident_w_bytes = 3 * Fp0 * Cp * w_isz          # fused fc1 (2*Fp0) + fc2 (Fp0)
    if resident_w_bytes <= budget // 3 and footprint(tm, Fp0, False) <= budget:
        tk, Fp = Fp0, Fp0
    else:
        tk, Fp = None, None
        for cand in (512, 384, 256, 128):
            cand = min(cand, Fp0)
            if footprint(tm, cand, True) <= budget:
                tk, Fp = cand, _round_up(Fp0, cand)
                break
        if tk is None:
            tk = 128
            Fp = _round_up(Fp0, tk)
            while tm > sublane and footprint(tm, tk, True) > budget:
                tm = max(sublane, _round_up(tm // 2, sublane))

    nk = Fp // tk
    use_scratch = (nk > 1) and (jnp.dtype(out_dtype) != jnp.dtype(jnp.float32))

    # --- one-time weight layout: split, cast, pad, interleave per tk block ---
    pad_c, pad_f = Cp - C, Fp - d_ff
    w1a = jnp.pad(w1[:, :d_ff].astype(matmul_dtype), ((0, pad_c), (0, pad_f)))
    w1b = jnp.pad(w1[:, d_ff:].astype(matmul_dtype), ((0, pad_c), (0, pad_f)))
    # Block k of the fused weight holds [gate cols k*tk:(k+1)*tk | value cols ...].
    w1f = jnp.concatenate(
        [w1a.reshape(Cp, nk, 1, tk), w1b.reshape(Cp, nk, 1, tk)], axis=2
    ).reshape(Cp, 2 * Fp)
    w2p = jnp.pad(w2.astype(matmul_dtype), ((0, pad_f), (0, pad_c)))
    w1f, w2p = jax.block_until_ready((w1f, w2p))     # materialize once at init

    return dict(
        w1f=w1f, w2=w2p, C=C, d_ff=d_ff, Cp=Cp, Fp=Fp, tk=tk, nk=nk, tm=tm,
        sublane=sublane, matmul_dtype=matmul_dtype, out_dtype=jnp.dtype(out_dtype),
        use_scratch=use_scratch, vmem_cap=vmem_cap,
    )


def swiglu_ffn(x, params):
    """SwiGLU FFN forward.  x: [B, T, C] (C == params['C'])."""
    B, T, C = x.shape
    assert C == params["C"]
    Cp, tk, nk = params["Cp"], params["tk"], params["nk"]
    tm_cfg, sublane = params["tm"], params["sublane"]
    mm_dtype, out_dtype = params["matmul_dtype"], params["out_dtype"]
    use_scratch = params["use_scratch"]

    M = B * T
    tm = min(tm_cfg, _round_up(M, sublane))
    Mp = _round_up(M, tm)
    n_row_tiles = Mp // tm

    # Single fused pad+cast pass over the (small) activations.
    x2d = jnp.pad(x.reshape(M, C).astype(mm_dtype), ((0, Mp - M), (0, Cp - C)))

    kernel = _make_swiglu_kernel(tk, use_scratch)
    scratch_shapes = ((pltpu.VMEM((tm, Cp), jnp.float32),) if use_scratch else ())

    w_isz = jnp.dtype(mm_dtype).itemsize
    out_isz = jnp.dtype(out_dtype).itemsize
    # Weights are re-streamed once per row tile when the k axis is not collapsed.
    w_bytes = int((params["w1f"].size + params["w2"].size) * w_isz)
    w_reads = w_bytes * (n_row_tiles if nk > 1 else 1)
    cost = pl.CostEstimate(
        flops=int(6 * M * C * params["d_ff"]),
        transcendentals=int(M * params["d_ff"]),
        bytes_accessed=int(x2d.size * x2d.dtype.itemsize + w_reads + Mp * Cp * out_isz),
    )

    footprint = (2 * tm * Cp * w_isz + 2 * (2 * tk) * Cp * w_isz
                 + 2 * tk * Cp * w_isz + 2 * tm * Cp * out_isz
                 + (tm * Cp * 4 if use_scratch else 0))
    vmem_limit = max(32 * 1024 * 1024, int(1.5 * footprint), footprint + (2 << 20))
    vmem_limit = min(vmem_limit, int(params["vmem_cap"]))

    out2d = pl.pallas_call(
        kernel,
        out_shape=jax.ShapeDtypeStruct((Mp, Cp), out_dtype),
        grid_spec=pltpu.PrefetchScalarGridSpec(
            num_scalar_prefetch=0,
            grid=(n_row_tiles, nk),
            in_specs=[
                pl.BlockSpec((tm, Cp), lambda i, k: (i, 0)),       # x rows (resident over k)
                pl.BlockSpec((Cp, 2 * tk), lambda i, k: (0, k)),   # fused fc1 block
                pl.BlockSpec((tk, Cp), lambda i, k: (k, 0)),       # fc2 block
            ],
            out_specs=pl.BlockSpec((tm, Cp), lambda i, k: (i, 0)),
            scratch_shapes=scratch_shapes,
        ),
        compiler_params=pltpu.CompilerParams(
            dimension_semantics=("parallel", "arbitrary"),
            vmem_limit_bytes=vmem_limit,
        ),
        cost_estimate=cost,
    )(x2d, params["w1f"], params["w2"])

    return out2d[:M, :C].reshape(B, T, C)


def reference_swiglu(x, w1, w2):
    x_proj = jnp.einsum("btc,cf->btf", x, w1)
    d_ff = w1.shape[1] // 2
    x1, x2 = x_proj[..., :d_ff], x_proj[..., d_ff:]
    return jnp.einsum("btf,fc->btc", x1 * jax.nn.sigmoid(x1) * x2, w2)


if __name__ == "__main__":
    # Module config: n_embd=48 -> d_ff = int(8/3 * 48) = 128
    n_embd = 48
    d_ff = int(8 / 3 * n_embd)          # 128
    B, T = 2, 8                          # M = 16 rows

    key = jax.random.PRNGKey(0)
    kx, k1, k2 = jax.random.split(key, 3)

    x = jax.random.normal(kx, (B, T, n_embd), dtype=jnp.float32)
    # deterministic synthetic weights ([in, out] layout; bias=False)
    w1 = jax.random.normal(k1, (n_embd, 2 * d_ff), dtype=jnp.float32) * 0.02
    w2 = jax.random.normal(k2, (d_ff, n_embd), dtype=jnp.float32) * 0.02

    ref = reference_swiglu(x, w1, w2)

    # Default path: bf16 matmul inputs, f32 accumulation (one-time weight prep).
    params_bf16 = prepare_swiglu_params(
        w1, w2, n_rows_hint=B * T, matmul_dtype=jnp.bfloat16, out_dtype=x.dtype)
    out = swiglu_ffn(x, params_bf16)
    jax.block_until_ready(out)
    assert out.shape == (B, T, n_embd)
    err = float(jnp.max(jnp.abs(out - ref)))
    scale = float(jnp.max(jnp.abs(ref)))
    assert err <= 5e-3 + 2e-2 * scale, (err, scale)   # bf16-appropriate tolerance

    # Strict-precision sanity check: f32 matmul path matches the reference tightly.
    params_f32 = prepare_swiglu_params(
        w1, w2, n_rows_hint=B * T, matmul_dtype=jnp.float32, out_dtype=x.dtype)
    out_f32 = swiglu_ffn(x, params_f32)
    jax.block_until_ready(out_f32)
    assert jnp.allclose(out_f32, ref, atol=1e-4, rtol=1e-4), \
        float(jnp.max(jnp.abs(out_f32 - ref)))

    print("KERNEL_OK")
</pallas_src>

<mosaic_0001>
module attributes {stable_mosaic.version = 11 : i64} {
  func.func @kernel(%arg0: i32, %arg1: i32, %arg2: memref<16x128xbf16, #tpu.memory_space<vmem>>, %arg3: memref<128x256xbf16, #tpu.memory_space<vmem>>, %arg4: memref<128x128xbf16, #tpu.memory_space<vmem>>, %arg5: memref<16x128xf32, #tpu.memory_space<vmem>>) attributes {dimension_semantics = [#tpu.dimension_semantics<parallel>, #tpu.dimension_semantics<arbitrary>], iteration_bounds = array<i64: 1, 1>, scalar_prefetch = 0 : i64, scratch_operands = 0 : i64, tpu.core_type = #tpu.core_type<tc>, window_params = [{transform_indices = @transform_0, window_bounds = array<i64: 16, 128>}, {transform_indices = @transform_1, window_bounds = array<i64: 128, 256>}, {transform_indices = @transform_2, window_bounds = array<i64: 128, 128>}, {transform_indices = @transform_3, window_bounds = array<i64: 16, 128>}]} {
    %c0 = arith.constant 0 : index
    %c0_0 = arith.constant 0 : index
    %0 = vector.load %arg2[%c0, %c0_0] : memref<16x128xbf16, #tpu.memory_space<vmem>>, vector<16x128xbf16>
    %c0_1 = arith.constant 0 : index
    %c0_2 = arith.constant 0 : index
    %1 = vector.load %arg3[%c0_1, %c0_2] : memref<128x256xbf16, #tpu.memory_space<vmem>>, vector<128x256xbf16>
    %cst = arith.constant dense<0.000000e+00> : vector<16x256xf32>
    %2 = tpu.matmul %0, %1, %cst {dimension_numbers = #tpu.dot_dimension_numbers<[1], [0], [0], [1], [0, 0, 1, 1], [], []>} : vector<16x128xbf16>, vector<128x256xbf16>, vector<16x256xf32> -> vector<16x256xf32>
    %3 = vector.extract_strided_slice %2 {offsets = [0, 0], sizes = [16, 128], strides = [1, 1]} : vector<16x256xf32> to vector<16x128xf32>
    %4 = vector.extract_strided_slice %2 {offsets = [0, 128], sizes = [16, 128], strides = [1, 1]} : vector<16x256xf32> to vector<16x128xf32>
    %5 = arith.negf %3 : vector<16x128xf32>
    %6 = math.exp %5 : vector<16x128xf32>
    %cst_3 = arith.constant 1.000000e+00 : f32
    %7 = vector.broadcast %cst_3 : f32 to vector<16x128xf32>
    %8 = arith.addf %7, %6 : vector<16x128xf32>
    %9 = arith.divf %7, %8 : vector<16x128xf32>
    %10 = arith.mulf %3, %9 : vector<16x128xf32>
    %11 = arith.mulf %10, %4 : vector<16x128xf32>
    %12 = arith.truncf %11 : vector<16x128xf32> to vector<16x128xbf16>
    %c0_4 = arith.constant 0 : index
    %c0_5 = arith.constant 0 : index
    %13 = vector.load %arg4[%c0_4, %c0_5] : memref<128x128xbf16, #tpu.memory_space<vmem>>, vector<128x128xbf16>
    %cst_6 = arith.constant dense<0.000000e+00> : vector<16x128xf32>
    %14 = tpu.matmul %12, %13, %cst_6 {dimension_numbers = #tpu.dot_dimension_numbers<[1], [0], [0], [1], [0, 0, 1, 1], [], []>} : vector<16x128xbf16>, vector<128x128xbf16>, vector<16x128xf32> -> vector<16x128xf32>
    %c0_i32 = arith.constant 0 : i32
    %15 = arith.cmpi eq, %arg1, %c0_i32 : i32
    %16 = arith.extui %15 : i1 to i32
    %c0_i32_7 = arith.constant 0 : i32
    %17 = arith.cmpi ne, %16, %c0_i32_7 : i32
    scf.if %17 {
      %c0_10 = arith.constant 0 : index
      %c0_11 = arith.constant 0 : index
      %21 = vector.load %arg5[%c0_10, %c0_11] : memref<16x128xf32, #tpu.memory_space<vmem>>, vector<16x128xf32>
      tpu.vector_store %arg5[%c0_10, %c0_11], %14 {strides = array<i32>} : memref<16x128xf32, #tpu.memory_space<vmem>>, vector<16x128xf32>,
    } else {
    }
    %c0_i32_8 = arith.constant 0 : i32
    %18 = arith.cmpi sgt, %arg1, %c0_i32_8 : i32
    %19 = arith.extui %18 : i1 to i32
    %c0_i32_9 = arith.constant 0 : i32
    %20 = arith.cmpi ne, %19, %c0_i32_9 : i32
    scf.if %20 {
      %c0_10 = arith.constant 0 : index
      %c0_11 = arith.constant 0 : index
      %21 = vector.load %arg5[%c0_10, %c0_11] : memref<16x128xf32, #tpu.memory_space<vmem>>, vector<16x128xf32>
      %22 = arith.addf %21, %14 : vector<16x128xf32>
      %c0_12 = arith.constant 0 : index
      %c0_13 = arith.constant 0 : index
      %23 = vector.load %arg5[%c0_12, %c0_13] : memref<16x128xf32, #tpu.memory_space<vmem>>, vector<16x128xf32>
      tpu.vector_store %arg5[%c0_12, %c0_13], %22 {strides = array<i32>} : memref<16x128xf32, #tpu.memory_space<vmem>>, vector<16x128xf32>,
    } else {
    }
    return
  }
  func.func @transform_0(%arg0: i32, %arg1: i32) -> (i32, i32) {
    %c0_i32 = arith.constant 0 : i32
    %c0_i32_0 = arith.constant 0 : i32
    return %arg0, %c0_i32 : i32, i32
  }
  func.func @transform_1(%arg0: i32, %arg1: i32) -> (i32, i32) {
    %c0_i32 = arith.constant 0 : i32
    %c0_i32_0 = arith.constant 0 : i32
    return %c0_i32, %arg1 : i32, i32
  }
  func.func @transform_2(%arg0: i32, %arg1: i32) -> (i32, i32) {
    %c0_i32 = arith.constant 0 : i32
    %c0_i32_0 = arith.constant 0 : i32
    return %arg1, %c0_i32 : i32, i32
  }
  func.func @transform_3(%arg0: i32, %arg1: i32) -> (i32, i32) {
    %c0_i32 = arith.constant 0 : i32
    %c0_i32_0 = arith.constant 0 : i32
    return %arg0, %c0_i32 : i32, i32
  }
}

</mosaic_0001>

<bundles_post_ra>
// kernel: tpu_custom_call.1
= control target key start
LH: loop header
LB: loop body
LE: loop exit
PB: predicated region body
PF: predicated region fallthrough
CT: control target
= control target key end

     0   :  { %8 = vsyncpa [#allocation3], 0  ;;  %s647_s0 = inlined_call_operand.hbm [shape: bf16[16,128], index: 0, kind: input, shape index: {}]   ;;  %s648_s1 = inlined_call_operand.hbm [shape: bf16[128,256], index: 1, kind: input, shape index: {}]   ;;  %s649_s2 = inlined_call_operand.hbm [shape: bf16[128,128], index: 2, kind: input, shape index: {}]   ;;  %s650_s3 = inlined_call_operand.hbm [shape: f32[16,128], index: 3, kind: output, shape index: {}]  }
   0x1   :  { %9 = vsyncpa [#allocation6], 0 }
   0x2   :  { %10 = vsyncpa [#allocation4], 0  ;;  %s562_s12 = smov [#allocation5]   ;;  %s468_s16 = scalar_lea.hbm %s648_s1, 2048 }
   0x3   :  { %s28_s13 = sshll.u32 %s562_s12, 4  ;;  %p469_p0 = scmp.ne.s32.totalorder %s648_s1, %s468_s16  ;;  %s29_s13 = int_to_ptr.vmem [resolvable:$true] %s28_s13 }
   0x4   :  { %p472_p1 = scmp.lt.u32.totalorder %s468_s16, %s648_s1 }
   0x6   :  { %p474_p2 = pnand %p472_p1, %p469_p0 }
   0x8   :  { %477 = shalt.err (!%p474_p2)
}
   0x9   :  { %s478_s21 = scalar_lea.vmem %s29_s13, 2048  ;;  %p483_p4 = scmp.lt.s32.totalorder %s29_s13, %s29_s13 }
   0xa   :  { %p479_p3 = scmp.ne.s32.totalorder %s29_s13, %s478_s21  ;;  %p484_p5 = scmp.lt.s32.totalorder %s478_s21, %s478_s21 }
   0xc   :  { %p485_p6 = por %p484_p5, %p483_p4 }
   0xe   :  { %p486_p7 = pnand %p485_p6, %p479_p3 }
  0x10   :  { %489 = shalt.err (!%p486_p7)
}
  0x11   :  { %s563_s22 = smov 128   ;;  %s564_s23 = smov 8  }
  0x12   :  { %34 = dma.hbm_to_vmem [thread:$0]  %s648_s1, 2048, %s29_s13, [#allocation6], %s563_s22, %s563_s22, %s564_s23  }
  0x13   :  { %s565_s26 = smov [#allocation2]   ;;  %s490_s30 = scalar_lea.hbm %s647_s0, 128 }
  0x14   :  { %s16_s27 = sshll.u32 %s565_s26, 4  ;;  %p491_p8 = scmp.ne.s32.totalorder %s647_s0, %s490_s30  ;;  %s17_s27 = int_to_ptr.vmem [resolvable:$true] %s16_s27 }
  0x15   :  { %p494_p9 = scmp.lt.u32.totalorder %s490_s30, %s647_s0 }
  0x17   :  { %p496_p10 = pnand %p494_p9, %p491_p8 }
  0x19   :  { %499 = shalt.err (!%p496_p10)
}
  0x1a   :  { %s500_s8 = scalar_lea.vmem %s17_s27, 128  ;;  %p505_p12 = scmp.lt.s32.totalorder %s17_s27, %s17_s27 }
  0x1b   :  { %p501_p11 = scmp.ne.s32.totalorder %s17_s27, %s500_s8  ;;  %p506_p13 = scmp.lt.s32.totalorder %s500_s8, %s500_s8 }
  0x1d   :  { %p507_p0 = por %p506_p13, %p505_p12 }
  0x1f   :  { %p508_p1 = pnand %p507_p0, %p501_p11 }
  0x21   :  { %511 = shalt.err (!%p508_p1)
}
  0x22   :  { %s566_s1 = smov 64   ;;  %s567_s9 = smov 4  }
  0x23   :  { %22 = dma.hbm_to_vmem [thread:$0]  %s647_s0, 128, %s17_s27, [#allocation3], %s566_s1, %s566_s1, %s567_s9  }
  0x24   :  { %s568_s12 = smov [#allocation7]   ;;  %s512_s16 = scalar_lea.hbm %s649_s2, 1024 }
  0x25   :  { %s40_s13 = sshll.u32 %s568_s12, 4  ;;  %p513_p2 = scmp.ne.s32.totalorder %s649_s2, %s512_s16  ;;  %s41_s13 = int_to_ptr.vmem [resolvable:$true] %s40_s13 }
  0x26   :  { %p516_p3 = scmp.lt.u32.totalorder %s512_s16, %s649_s2 }
  0x28   :  { %p518_p4 = pnand %p516_p3, %p513_p2 }
  0x2a   :  { %521 = shalt.err (!%p518_p4)
}
  0x2b   :  { %s522_s21 = scalar_lea.vmem %s41_s13, 1024  ;;  %p527_p6 = scmp.lt.s32.totalorder %s41_s13, %s41_s13 }
  0x2c   :  { %p523_p5 = scmp.ne.s32.totalorder %s41_s13, %s522_s21  ;;  %p528_p7 = scmp.lt.s32.totalorder %s522_s21, %s522_s21 }
  0x2e   :  { %p529_p8 = por %p528_p7, %p527_p6 }
  0x30   :  { %p530_p9 = pnand %p529_p8, %p523_p5 }
  0x32   :  { %533 = shalt.err (!%p530_p9)
}
  0x33   :  { %46 = dma.hbm_to_vmem [thread:$0]  %s649_s2, 1024, %s41_s13, [#allocation6], %s566_s1, %s566_s1, %s567_s9  }
  0x34   :  { %556 = dma.done.wait [#allocation3], 128  }
  0x35   :  { %557 = vsyncadd [#allocation3], 4294967168 }
  0x36   :  { %558 = dma.done.wait [#allocation6], 3072  }
  0x37   :  { %559 = vsyncadd [#allocation6], 4294964224  ;;  %v569_v0 = vmov 0   ;;  %v427_v1 = vld [vmem:[#allocation5 + $0x4] ss:$8 sps:$4 sm:$0xff]   ;;  %v451_v17 = vld [vmem:[#allocation2] sm:$0xff]  }
  0x38   :  { %193 = vmatprep.mubr.bf16.mxu0 %v569_v0  ;;  %v429_v2 = vld [vmem:[#allocation5] ss:$8 sps:$4 sm:$0xff]   ;;  %161 = vmatprep.subr.bf16.mxu0 %v427_v1  ;;  %v430_v3 = vld [vmem:[#allocation5 + $0x14] ss:$8 sps:$4 sm:$0xff]   ;;  %v432_v4 = vld [vmem:[#allocation5 + $0x10] ss:$8 sps:$4 sm:$0xff]  }
  0x39   :  { %162 = vmatpush1.bf16.msra.mxu0 %v429_v2  ;;  %v433_v5 = vld [vmem:[#allocation5 + $0x24] ss:$8 sps:$4 sm:$0xff]   ;;  %v435_v6 = vld [vmem:[#allocation5 + $0x20] ss:$8 sps:$4 sm:$0xff]   ;;  %v436_v7 = vld [vmem:[#allocation5 + $0x34] ss:$8 sps:$4 sm:$0xff]  }
  0x3a   :  { %163 = vmatprep.subr.bf16.mxu0 %v430_v3  ;;  %v438_v8 = vld [vmem:[#allocation5 + $0x30] ss:$8 sps:$4 sm:$0xff]   ;;  %v439_v9 = vld [vmem:[#allocation5 + $0x44] ss:$8 sps:$4 sm:$0xff]   ;;  %v441_v10 = vld [vmem:[#allocation5 + $0x40] ss:$8 sps:$4 sm:$0xff]  }
  0x3b   :  { %v442_v11 = vld [vmem:[#allocation5 + $0x54] ss:$8 sps:$4 sm:$0xff]   ;;  %v444_v12 = vld [vmem:[#allocation5 + $0x50] ss:$8 sps:$4 sm:$0xff]   ;;  %v445_v13 = vld [vmem:[#allocation5 + $0x64] ss:$8 sps:$4 sm:$0xff]  }
  0x3c   :  { %v447_v14 = vld [vmem:[#allocation5 + $0x60] ss:$8 sps:$4 sm:$0xff]   ;;  %v448_v15 = vld [vmem:[#allocation5 + $0x74] ss:$8 sps:$4 sm:$0xff]   ;;  %v450_v16 = vld [vmem:[#allocation5 + $0x70] ss:$8 sps:$4 sm:$0xff]  }
  0x3d   :  { %164 = vmatpush1.bf16.msra.mxu0 %v432_v4  ;;  %v452_v18 = vld [vmem:[#allocation7] sm:$0xff]   ;;  %v570_v19 = vmov 0.0   ;;  %v453_v20 = vld [vmem:[#allocation7 + $0x8] sm:$0xff]   ;;  %v454_v21 = vld [vmem:[#allocation7 + $0x10] sm:$0xff]   ;;  %vm571_vm0 = vmmov 0   ;;  %s572_s2 = smov [#allocation8]  }
  0x3e   :  { %165 = vmatprep.subr.bf16.mxu0 %v433_v5  ;;  %396 = vmatprep.subr.bf16.mxu1 %v570_v19  ;;  %v455_v22 = vld [vmem:[#allocation7 + $0x18] sm:$0xff]   ;;  %v456_v23 = vld [vmem:[#allocation7 + $0x20] sm:$0xff]   ;;  %v457_v24 = vld [vmem:[#allocation7 + $0x28] sm:$0xff]   ;;  %s347_s25 = sshll.u32 %s572_s2, 4  ;;  %s348_s25 = int_to_ptr.vmem [resolvable:$true] %s347_s25 }
  0x3f   :  { %397 = vmatpush3.bf16.msra.mxu1 %v452_v18  ;;  %v458_v25 = vld [vmem:[#allocation7 + $0x30] sm:$0xff]   ;;  %v459_v26 = vld [vmem:[#allocation7 + $0x38] sm:$0xff]   ;;  %412 = vmatprep.mubr.msk.bf16.mxu1 %vm571_vm0, %v570_v19  ;;  %s534_s26 = scalar_lea.vmem %s348_s25, 256  ;;  %p539_p11 = scmp.lt.s32.totalorder %s348_s25, %s348_s25 }
  0x40   :  { %398 = vmatprep.subr.bf16.mxu1 %v570_v19  ;;  %p535_p10 = scmp.ne.s32.totalorder %s348_s25, %s534_s26  ;;  %p540_p12 = scmp.lt.s32.totalorder %s534_s26, %s534_s26 }
  0x41   :  { %166 = vmatpush1.bf16.msra.mxu0 %v435_v6 }
  0x42   :  { %167 = vmatprep.subr.bf16.mxu0 %v436_v7  ;;  %p541_p13 = por %p540_p12, %p539_p11 }
  0x43   :  { %399 = vmatpush3.bf16.msra.mxu1 %v453_v20 }
  0x44   :  { %400 = vmatprep.subr.bf16.mxu1 %v570_v19  ;;  %p542_p0 = pnand %p541_p13, %p535_p10 }
  0x45   :  { %168 = vmatpush1.bf16.msra.mxu0 %v438_v8 }
  0x46   :  { %169 = vmatprep.subr.bf16.mxu0 %v439_v9 }
  0x47   :  { %401 = vmatpush3.bf16.msra.mxu1 %v454_v21 }
  0x48   :  { %402 = vmatprep.subr.bf16.mxu1 %v570_v19 }
  0x49   :  { %170 = vmatpush1.bf16.msra.mxu0 %v441_v10 }
  0x4a   :  { %171 = vmatprep.subr.bf16.mxu0 %v442_v11 }
  0x4b   :  { %403 = vmatpush3.bf16.msra.mxu1 %v455_v22 }
  0x4c   :  { %404 = vmatprep.subr.bf16.mxu1 %v570_v19 }
  0x4d   :  { %172 = vmatpush1.bf16.msra.mxu0 %v444_v12 }
  0x4e   :  { %173 = vmatprep.subr.bf16.mxu0 %v445_v13 }
  0x4f   :  { %405 = vmatpush3.bf16.msra.mxu1 %v456_v23 }
  0x50   :  { %406 = vmatprep.subr.bf16.mxu1 %v570_v19 }
  0x51   :  { %174 = vmatpush1.bf16.msra.mxu0 %v447_v14 }
  0x52   :  { %175 = vmatprep.subr.bf16.mxu0 %v448_v15 }
  0x53   :  { %407 = vmatpush3.bf16.msra.mxu1 %v457_v24 }
  0x54   :  { %408 = vmatprep.subr.bf16.mxu1 %v570_v19 }
  0x55   :  { %176 = vmatpush1.bf16.msra.mxu0 %v450_v16 }
  0x57   :  { %409 = vmatpush3.bf16.msra.mxu1 %v458_v25 }
  0x58   :  { %194 = vmatmul.mubr.bf16.vlgmr.msra.gmra.mrb[0].mxu0 %v451_v17  ;;  %410 = vmatprep.subr.bf16.mxu1 %v570_v19 }
  0x5b   :  { %411 = vmatpush3.bf16.msra.mxu1 %v459_v26 }
 0x12b   :  { %v195_v27 = vpop.f32.mrb[0].mxu0 }
 0x12c   :  { %v377_v28 = vmul.f32 -1.442695, %v195_v27  ;;  %v197_v29 = vpop.f32.mrb[1].mxu0 }
 0x12d   :  { %v199_v30 = vpop.f32.mrb[2].mxu0 }
 0x12e   :  { %460 = vpow2.f32 %v377_v28  ;;  %v378_v31 = vmul.f32 -1.442695, %v199_v30  ;;  %v201_v32 = vpop.f32.mrb[3].mxu0 }
 0x130   :  { %462 = vpow2.f32 %v378_v31 }
 0x138   :  { %v461_v33 = vpop.eup %460 }
 0x139   :  { %v210_v34 = vadd.f32 1.0, %v461_v33 }
 0x13a   :  { %v463_v35 = vpop.eup %462 }
 0x13b   :  { %464 = vrcp.f32 %v210_v34  ;;  %v211_v36 = vadd.f32 1.0, %v463_v35 }
 0x13d   :  { %466 = vrcp.f32 %v211_v36 }
 0x145   :  { %v465_v37 = vpop.eup %464 }
 0x146   :  { %v216_v38 = vmul.f32 %v465_v37, %v195_v27 }
 0x147   :  { %v467_v39 = vpop.eup %466 }
 0x148   :  { %v218_v40 = vmul.f32 %v216_v38, %v197_v29  ;;  %v217_v41 = vmul.f32 %v467_v39, %v199_v30 }
 0x14a   :  { %v219_v42 = vmul.f32 %v217_v41, %v201_v32 }
 0x14c   :  { %v220_v43 = vpack.c.bf16 %v219_v42, %v218_v40 }
 0x14e   :  { %413 = vmatmul.mubr.bf16.vlgmr.msra.gmra.mrb[0].mxu1 %v220_v43 }
 0x221   :  { %v319_v44 = vpop.f32.mrb[0].mxu1 }
 0x222   :  { %330 = vst [vmem:[#allocation8] sm:$0xff] %v319_v44  ;;  %v414_v45 = vpop.f32.mrb[1].mxu1 }
 0x223   :  { %v322_v46 = vpop.f32.mrb[2].mxu1 }
 0x224   :  { %331 = vst [vmem:[#allocation8 + $0x8] sm:$0xff] %v322_v46  ;;  %v415_v47 = vpop.f32.mrb[3].mxu1 }
 0x225   :  { %545 = shalt.err (!%p542_p0)
}
 0x226   :  { %s546_s29 = scalar_lea.hbm %s650_s3, 256 }
 0x227   :  { %p547_p1 = scmp.ne.s32.totalorder %s650_s3, %s546_s29  ;;  %p550_p2 = scmp.lt.u32.totalorder %s546_s29, %s650_s3 }
 0x229   :  { %p552_p3 = pnand %p550_p2, %p547_p1 }
 0x22b   :  { %555 = shalt.err (!%p552_p3)
}
 0x22c   :  { %353 = dma.vmem_to_hbm [thread:$0]  %s348_s25, 256, %s650_s3, [#allocation4], %s563_s22, %s563_s22, %s564_s23  }
 0x22d   :  { %560 = dma.done.wait [#allocation4], 256  }
 0x22e   :  { %561 = vsyncadd [#allocation4], 4294967040 }
 0x22f   :  { %357 = vsyncpa [#allocation3], 1 }
 0x230   :  { %358 = vsyncpa [#allocation6], 1 }
 0x231   :  { %359 = vsyncpa [#allocation4], 1 }

</bundles_post_ra>
